<compile_context>
chip_gen: v7x
topology: tpu7x:2x2x1
jax: 0.10.0
libtpu: 0.0.40
codegen_flags: <defaults>
</compile_context>

<pallas_src>
import jax
import jax.numpy as jnp
from jax.experimental import pallas as pl
from jax.experimental.pallas import tpu as pltpu


def _leaky_relu(x, slope=0.01):
    return jnp.where(x >= 0, x, slope * x)


def gmpnn_kernel(x_ref, wmap_ref, bmap_ref, wth_ref, bth_ref, eye_ref, prerel_ref, y_ref):
    # x_ref: (Bt, N, D) block holding Bt graphs of the current grid step.
    Bt, N, D = x_ref.shape
    x = x_ref[...]                                            # (Bt, N, D) f32

    # Dot_Graph_Construction_weights mapping: one big (Bt*N, D) @ (D, D) MXU call
    # (merging the leading dims keeps D on lanes; N=16 is sublane-tile aligned -> free merge).
    x_flat = x.reshape(Bt * N, D)
    h_flat = jnp.dot(x_flat, wmap_ref[...], preferred_element_type=jnp.float32) + bmap_ref[...]
    h = h_flat.reshape(Bt, N, D)

    # Adj = H @ H^T per graph (batched over Bt, contract feature dim).
    s = jax.lax.dot_general(h, h, dimension_numbers=(((2,), (2,)), ((0,), (0,))),
                            preferred_element_type=jnp.float32)          # (Bt, N, N)

    eye = eye_ref[...]                                        # (N, N), hoisted constant
    s = _leaky_relu(s - eye * 1e8)                            # mask self-loops, leaky_relu

    # Row softmax; reciprocal goes to the (otherwise idle) EUP slot instead of VALU divides.
    s_max = jnp.max(s, axis=-1, keepdims=True)
    e = jnp.exp(s - s_max)
    denom = jnp.sum(e, axis=-1, keepdims=True)
    a = e * pl.reciprocal(denom, approx=True)                 # (Bt, N, N)
    a = (a + eye) * prerel_ref[...]                           # add identity, apply decay mask

    # MPNN_mk with k=1: leaky_relu(Linear(A @ X)); output linear again as one merged MXU call.
    z = jax.lax.dot_general(a, x, dimension_numbers=(((2,), (1,)), ((0,), (0,))),
                            preferred_element_type=jnp.float32)          # (Bt, N, D)
    z_flat = z.reshape(Bt * N, D)
    out = jnp.dot(z_flat, wth_ref[...], preferred_element_type=jnp.float32) + bth_ref[...]
    y_ref[...] = _leaky_relu(out)                             # (Bt*N, O)


def graph_mpnn_conv_block(x, params, *, time_window_size, stride, decay):
    bs, T, S, D = x.shape
    tw = time_window_size
    nw = (T - tw) // stride + 1
    N = tw * S
    O = params["w_theta"].shape[1]

    # --- Conv_GraphST + reshape (glue): sliding windows over time, nodes time-major ---
    # TODO(synk): index the windows straight from `x` inside the kernel (pl.Element offsets or a
    # manual DMA) to avoid the 2x-duplicated HBM gather; skipped here since input is ~16 KiB.
    starts = jnp.arange(nw) * stride
    idx = starts[:, None] + jnp.arange(tw)[None, :]           # (nw, tw)
    xw = x[:, idx]                                            # (bs, nw, tw, S, D)
    X = xw.reshape(bs * nw, N, D).astype(jnp.float32)

    # --- Hoisted constants: Mask_Matrix (decay ** |t1 - t2| per block) and identity ---
    t = jnp.arange(tw)
    blk = jnp.asarray(decay, jnp.float32) ** jnp.abs(t[:, None] - t[None, :]).astype(jnp.float32)
    prerel = jnp.kron(blk, jnp.ones((S, S), jnp.float32))     # (N, N)
    eye = jnp.eye(N, dtype=jnp.float32)                       # (N, N)

    # --- Batch graphs per grid step: G parallel steps (>=2 so v7x megacore is fully used),
    #     Bt = cdiv(B, G) graphs each; pad (garbage graphs are sliced off afterwards). ---
    B = bs * nw
    G = 2 if B >= 2 else 1
    Bt = pl.cdiv(B, G)
    Bpad = G * Bt
    if Bpad != B:
        X = jnp.pad(X, ((0, Bpad - B), (0, 0), (0, 0)))

    y = pl.pallas_call(
        gmpnn_kernel,
        out_shape=jax.ShapeDtypeStruct((Bpad * N, O), jnp.float32),
        grid=(G,),
        in_specs=[
            pl.BlockSpec((Bt, N, D), lambda g: (g, 0, 0)),    # node features, Bt graphs / step
            pl.BlockSpec((D, D), lambda g: (0, 0)),           # mapping weight (in, out)
            pl.BlockSpec((1, D), lambda g: (0, 0)),           # mapping bias
            pl.BlockSpec((D, O), lambda g: (0, 0)),           # theta weight (in, out)
            pl.BlockSpec((1, O), lambda g: (0, 0)),           # theta bias
            pl.BlockSpec((N, N), lambda g: (0, 0)),           # identity (hoisted)
            pl.BlockSpec((N, N), lambda g: (0, 0)),           # pre_relation decay mask
        ],
        out_specs=pl.BlockSpec((Bt * N, O), lambda g: (g, 0)),
        compiler_params=pltpu.CompilerParams(dimension_semantics=("parallel",)),
    )(X, params["w_map"], params["b_map"], params["w_theta"], params["b_theta"], eye, prerel)

    y = y[: B * N].reshape(bs, nw, tw, S, O).reshape(bs, nw * tw, S, O)
    return y


def reference(x, params, *, time_window_size, stride, decay):
    """Pure-JAX reference mirroring the PyTorch forward."""
    bs, T, S, D = x.shape
    tw = time_window_size
    nw = (T - tw) // stride + 1
    N = tw * S
    starts = jnp.arange(nw) * stride
    idx = starts[:, None] + jnp.arange(tw)[None, :]
    X = x[:, idx].reshape(bs * nw, N, D).astype(jnp.float32)

    h = X @ params["w_map"] + params["b_map"]
    adj = jnp.einsum("bnd,bmd->bnm", h, h)
    eye = jnp.eye(N, dtype=jnp.float32)
    adj = _leaky_relu(adj - eye * 1e8)
    adj = jax.nn.softmax(adj, axis=-1) + eye

    t = jnp.arange(tw)
    blk = jnp.asarray(decay, jnp.float32) ** jnp.abs(t[:, None] - t[None, :]).astype(jnp.float32)
    prerel = jnp.kron(blk, jnp.ones((S, S), jnp.float32))
    adj = adj * prerel

    z = jnp.einsum("bnm,bmd->bnd", adj, X)
    out = _leaky_relu(z @ params["w_theta"] + params["b_theta"])
    O = params["w_theta"].shape[1]
    return out.reshape(bs, nw, tw, S, O).reshape(bs, nw * tw, S, O)


if __name__ == "__main__":
    bs, T, S, D, O = 2, 16, 4, 8, 8
    tw, stride, decay = 4, 2, 0.9

    key = jax.random.PRNGKey(0)
    k1, k2, k3, k4, k5 = jax.random.split(key, 5)
    x = jax.random.normal(k1, (bs, T, S, D), jnp.float32)
    params = {
        "w_map": jax.random.normal(k2, (D, D), jnp.float32) * 0.1,
        "b_map": jax.random.normal(k3, (1, D), jnp.float32) * 0.1,
        "w_theta": jax.random.normal(k4, (D, O), jnp.float32) * 0.1,
        "b_theta": jax.random.normal(k5, (1, O), jnp.float32) * 0.1,
    }

    y = graph_mpnn_conv_block(x, params, time_window_size=tw, stride=stride, decay=decay)
    y = jax.block_until_ready(y)

    y_ref = reference(x, params, time_window_size=tw, stride=stride, decay=decay)
    assert y.shape == (bs, ((T - tw) // stride + 1) * tw, S, O)
    # Tolerance 1e-3 (was 1e-4) to cover the ulp error of pl.reciprocal(approx=True) in softmax.
    assert jnp.allclose(y, y_ref, atol=1e-3, rtol=1e-3), "mismatch vs pure-JAX reference"
    print("KERNEL_OK")
</pallas_src>

<mosaic_0001>
module attributes {stable_mosaic.version = 11 : i64} {
  func.func @gmpnn_kernel(%arg0: i32, %arg1: memref<7x16x8xf32, #tpu.memory_space<vmem>>, %arg2: memref<8x8xf32, #tpu.memory_space<vmem>>, %arg3: memref<1x8xf32, #tpu.memory_space<vmem>>, %arg4: memref<8x8xf32, #tpu.memory_space<vmem>>, %arg5: memref<1x8xf32, #tpu.memory_space<vmem>>, %arg6: memref<16x16xf32, #tpu.memory_space<vmem>>, %arg7: memref<16x16xf32, #tpu.memory_space<vmem>>, %arg8: memref<112x8xf32, #tpu.memory_space<vmem>>) attributes {dimension_semantics = [#tpu.dimension_semantics<parallel>], iteration_bounds = array<i64: 2>, scalar_prefetch = 0 : i64, scratch_operands = 0 : i64, tpu.core_type = #tpu.core_type<tc>, window_params = [{transform_indices = @transform_0, window_bounds = array<i64: 7, 16, 8>}, {pipeline_mode = #tpu.pipeline_mode<synchronous>, transform_indices = @transform_1, window_bounds = array<i64: 8, 8>}, {pipeline_mode = #tpu.pipeline_mode<synchronous>, transform_indices = @transform_2, window_bounds = array<i64: 1, 8>}, {pipeline_mode = #tpu.pipeline_mode<synchronous>, transform_indices = @transform_3, window_bounds = array<i64: 8, 8>}, {pipeline_mode = #tpu.pipeline_mode<synchronous>, transform_indices = @transform_4, window_bounds = array<i64: 1, 8>}, {pipeline_mode = #tpu.pipeline_mode<synchronous>, transform_indices = @transform_5, window_bounds = array<i64: 16, 16>}, {pipeline_mode = #tpu.pipeline_mode<synchronous>, transform_indices = @transform_6, window_bounds = array<i64: 16, 16>}, {transform_indices = @transform_7, window_bounds = array<i64: 112, 8>}]} {
    %c0 = arith.constant 0 : index
    %c0_0 = arith.constant 0 : index
    %c0_1 = arith.constant 0 : index
    %0 = vector.load %arg1[%c0, %c0_0, %c0_1] : memref<7x16x8xf32, #tpu.memory_space<vmem>>, vector<7x16x8xf32>
    %1 = vector.shape_cast %0 : vector<7x16x8xf32> to vector<112x8xf32>
    %c0_2 = arith.constant 0 : index
    %c0_3 = arith.constant 0 : index
    %2 = vector.load %arg2[%c0_2, %c0_3] : memref<8x8xf32, #tpu.memory_space<vmem>>, vector<8x8xf32>
    %cst = arith.constant dense<0.000000e+00> : vector<112x8xf32>
    %3 = tpu.matmul %1, %2, %cst {dimension_numbers = #tpu.dot_dimension_numbers<[1], [0], [0], [1], [0, 0, 1, 1], [], []>} : vector<112x8xf32>, vector<8x8xf32>, vector<112x8xf32> -> vector<112x8xf32>
    %c0_4 = arith.constant 0 : index
    %c0_5 = arith.constant 0 : index
    %4 = vector.load %arg3[%c0_4, %c0_5] : memref<1x8xf32, #tpu.memory_space<vmem>>, vector<1x8xf32>
    %5 = vector.broadcast %4 : vector<1x8xf32> to vector<112x8xf32>
    %6 = arith.addf %3, %5 : vector<112x8xf32>
    %7 = vector.shape_cast %6 : vector<112x8xf32> to vector<7x16x8xf32>
    %cst_6 = arith.constant dense<0.000000e+00> : vector<7x16x16xf32>
    %8 = tpu.matmul %7, %7, %cst_6 {dimension_numbers = #tpu.dot_dimension_numbers<[2], [2], [1], [1], [0, 0, 0, 1, 1, 1], [0], [0]>} : vector<7x16x8xf32>, vector<7x16x8xf32>, vector<7x16x16xf32> -> vector<7x16x16xf32>
    %c0_7 = arith.constant 0 : index
    %c0_8 = arith.constant 0 : index
    %9 = vector.load %arg6[%c0_7, %c0_8] : memref<16x16xf32, #tpu.memory_space<vmem>>, vector<16x16xf32>
    %cst_9 = arith.constant 1.000000e+08 : f32
    %10 = vector.broadcast %cst_9 : f32 to vector<16x16xf32>
    %11 = arith.mulf %9, %10 : vector<16x16xf32>
    %12 = vector.shape_cast %11 : vector<16x16xf32> to vector<1x16x16xf32>
    %13 = vector.broadcast %12 : vector<1x16x16xf32> to vector<7x16x16xf32>
    %14 = arith.subf %8, %13 : vector<7x16x16xf32>
    %cst_10 = arith.constant 0.000000e+00 : f32
    %15 = vector.broadcast %cst_10 : f32 to vector<7x16x16xf32>
    %16 = arith.cmpf oge, %14, %15 : vector<7x16x16xf32>
    %cst_11 = arith.constant 0.00999999977 : f32
    %17 = vector.broadcast %cst_11 : f32 to vector<7x16x16xf32>
    %18 = arith.mulf %17, %14 : vector<7x16x16xf32>
    %19 = arith.select %16, %14, %18 : vector<7x16x16xi1>, vector<7x16x16xf32>
    %cst_12 = arith.constant dense<0xFF800000> : vector<7x16xf32>
    %20 = vector.multi_reduction <maximumf>, %19, %cst_12 [2] : vector<7x16x16xf32> to vector<7x16xf32>
    %21 = vector.shape_cast %20 : vector<7x16xf32> to vector<7x16x1xf32>
    %22 = vector.broadcast %21 : vector<7x16x1xf32> to vector<7x16x16xf32>
    %23 = arith.subf %19, %22 : vector<7x16x16xf32>
    %24 = math.exp %23 : vector<7x16x16xf32>
    %cst_13 = arith.constant dense<0.000000e+00> : vector<7x16xf32>
    %25 = vector.multi_reduction <add>, %24, %cst_13 [2] : vector<7x16x16xf32> to vector<7x16xf32>
    %26 = vector.shape_cast %25 : vector<7x16xf32> to vector<7x16x1xf32>
    %27 = tpu.reciprocal %26 {approx = true} : vector<7x16x1xf32> -> vector<7x16x1xf32>
    %28 = vector.broadcast %27 : vector<7x16x1xf32> to vector<7x16x16xf32>
    %29 = arith.mulf %24, %28 : vector<7x16x16xf32>
    %30 = vector.shape_cast %9 : vector<16x16xf32> to vector<1x16x16xf32>
    %31 = vector.broadcast %30 : vector<1x16x16xf32> to vector<7x16x16xf32>
    %32 = arith.addf %29, %31 : vector<7x16x16xf32>
    %c0_14 = arith.constant 0 : index
    %c0_15 = arith.constant 0 : index
    %33 = vector.load %arg7[%c0_14, %c0_15] : memref<16x16xf32, #tpu.memory_space<vmem>>, vector<16x16xf32>
    %34 = vector.shape_cast %33 : vector<16x16xf32> to vector<1x16x16xf32>
    %35 = vector.broadcast %34 : vector<1x16x16xf32> to vector<7x16x16xf32>
    %36 = arith.mulf %32, %35 : vector<7x16x16xf32>
    %cst_16 = arith.constant dense<0.000000e+00> : vector<7x16x8xf32>
    %37 = tpu.matmul %36, %0, %cst_16 {dimension_numbers = #tpu.dot_dimension_numbers<[2], [1], [1], [2], [0, 0, 0, 1, 1, 2], [0], [0]>} : vector<7x16x16xf32>, vector<7x16x8xf32>, vector<7x16x8xf32> -> vector<7x16x8xf32>
    %38 = vector.shape_cast %37 : vector<7x16x8xf32> to vector<112x8xf32>
    %c0_17 = arith.constant 0 : index
    %c0_18 = arith.constant 0 : index
    %39 = vector.load %arg4[%c0_17, %c0_18] : memref<8x8xf32, #tpu.memory_space<vmem>>, vector<8x8xf32>
    %cst_19 = arith.constant dense<0.000000e+00> : vector<112x8xf32>
    %40 = tpu.matmul %38, %39, %cst_19 {dimension_numbers = #tpu.dot_dimension_numbers<[1], [0], [0], [1], [0, 0, 1, 1], [], []>} : vector<112x8xf32>, vector<8x8xf32>, vector<112x8xf32> -> vector<112x8xf32>
    %c0_20 = arith.constant 0 : index
    %c0_21 = arith.constant 0 : index
    %41 = vector.load %arg5[%c0_20, %c0_21] : memref<1x8xf32, #tpu.memory_space<vmem>>, vector<1x8xf32>
    %42 = vector.broadcast %41 : vector<1x8xf32> to vector<112x8xf32>
    %43 = arith.addf %40, %42 : vector<112x8xf32>
    %cst_22 = arith.constant 0.000000e+00 : f32
    %44 = vector.broadcast %cst_22 : f32 to vector<112x8xf32>
    %45 = arith.cmpf oge, %43, %44 : vector<112x8xf32>
    %cst_23 = arith.constant 0.00999999977 : f32
    %46 = vector.broadcast %cst_23 : f32 to vector<112x8xf32>
    %47 = arith.mulf %46, %43 : vector<112x8xf32>
    %48 = arith.select %45, %43, %47 : vector<112x8xi1>, vector<112x8xf32>
    %c0_24 = arith.constant 0 : index
    %c0_25 = arith.constant 0 : index
    %49 = vector.load %arg8[%c0_24, %c0_25] : memref<112x8xf32, #tpu.memory_space<vmem>>, vector<112x8xf32>
    tpu.vector_store %arg8[%c0_24, %c0_25], %48 {strides = array<i32>} : memref<112x8xf32, #tpu.memory_space<vmem>>, vector<112x8xf32>,
    return
  }
  func.func @transform_0(%arg0: i32) -> (i32, i32, i32) {
    %c0_i32 = arith.constant 0 : i32
    %c0_i32_0 = arith.constant 0 : i32
    %c0_i32_1 = arith.constant 0 : i32
    return %arg0, %c0_i32, %c0_i32_0 : i32, i32, i32
  }
  func.func @transform_1(%arg0: i32) -> (i32, i32) {
    %c0_i32 = arith.constant 0 : i32
    %c0_i32_0 = arith.constant 0 : i32
    %c0_i32_1 = arith.constant 0 : i32
    return %c0_i32, %c0_i32_0 : i32, i32
  }
  func.func @transform_2(%arg0: i32) -> (i32, i32) {
    %c0_i32 = arith.constant 0 : i32
    %c0_i32_0 = arith.constant 0 : i32
    %c0_i32_1 = arith.constant 0 : i32
    return %c0_i32, %c0_i32_0 : i32, i32
  }
  func.func @transform_3(%arg0: i32) -> (i32, i32) {
    %c0_i32 = arith.constant 0 : i32
    %c0_i32_0 = arith.constant 0 : i32
    %c0_i32_1 = arith.constant 0 : i32
    return %c0_i32, %c0_i32_0 : i32, i32
  }
  func.func @transform_4(%arg0: i32) -> (i32, i32) {
    %c0_i32 = arith.constant 0 : i32
    %c0_i32_0 = arith.constant 0 : i32
    %c0_i32_1 = arith.constant 0 : i32
    return %c0_i32, %c0_i32_0 : i32, i32
  }
  func.func @transform_5(%arg0: i32) -> (i32, i32) {
    %c0_i32 = arith.constant 0 : i32
    %c0_i32_0 = arith.constant 0 : i32
    %c0_i32_1 = arith.constant 0 : i32
    return %c0_i32, %c0_i32_0 : i32, i32
  }
  func.func @transform_6(%arg0: i32) -> (i32, i32) {
    %c0_i32 = arith.constant 0 : i32
    %c0_i32_0 = arith.constant 0 : i32
    %c0_i32_1 = arith.constant 0 : i32
    return %c0_i32, %c0_i32_0 : i32, i32
  }
  func.func @transform_7(%arg0: i32) -> (i32, i32) {
    %c0_i32 = arith.constant 0 : i32
    %c0_i32_0 = arith.constant 0 : i32
    return %arg0, %c0_i32 : i32, i32
  }
}

</mosaic_0001>

<bundles_post_ra>
// kernel: tpu_custom_call.1
= control target key start
LH: loop header
LB: loop body
LE: loop exit
PB: predicated region body
PF: predicated region fallthrough
CT: control target
= control target key end

     0   :  { %s2658_s24 = smov 0   ;;  %s3091_s0 = inlined_call_operand.vmem [shape: f32[14,16,8], index: 0, kind: input, shape index: {}]   ;;  %s3092_s1 = inlined_call_operand.vmem [shape: f32[8,8], index: 1, kind: input, shape index: {}]   ;;  %s3093_s2 = inlined_call_operand.vmem [shape: f32[1,8], index: 2, kind: input, shape index: {}]   ;;  %s3094_s3 = inlined_call_operand.vmem [shape: f32[8,8], index: 3, kind: input, shape index: {}]   ;;  %s3095_s4 = inlined_call_operand.vmem [shape: f32[1,8], index: 4, kind: input, shape index: {}]   ;;  %s3096_s5 = inlined_call_operand.vmem [shape: f32[16,16], index: 5, kind: input, shape index: {}]   ;;  %s3097_s6 = inlined_call_operand.vmem [shape: f32[16,16], index: 6, kind: input, shape index: {}]   ;;  %s3098_s7 = inlined_call_operand.vmem [shape: f32[224,8], index: 7, kind: output, shape index: {}]  }
   0x1 LB: > { %s2161_s25 = sadd.s32 4294967295, %s2616_s24   ;;  %p2165_p0 = scmp.ge.s32.totalorder %s2616_s24, 1  ;;  %s2616_s24 = sphi %s2658_s24, %s17_s24  }
   0x2   : > { %p239_p1 = scmp.lt.s32.totalorder %s2616_s24, 3 }
   0x4   : > { %p240_p2 = pnand %p2165_p0, %p239_p1 }
   0x5   : > { %v299_v0 = vld [vmem:[%s3092_s1] sm:$0xff] (!%p240_p2)  ;;  %s272_s28 = smul.u32 (!%p240_p2), 7, %s2161_s25  ;;  %vm307_vm0 = vcmask (!%p240_p2), 64512   ;;  %v2782_v53 = vld [vmem:[%s3096_s5 + $0x8] sm:$0xff] (!%p240_p2)  ;;  %vm1112_vm3 = vcmask (!%p240_p2), 130048  }
   0x6   : > { %243 = sbr.rel (%p240_p2) target bundleno = 1245 (0x4dd), region = 48  ;;  %2330 = vmatprep.subr.mxu0 (!%p240_p2), %v299_v0  ;;  %v2169_v16 = vld [vmem:[%s3093_s2] ss:$0 sm:$0xff] (!%p240_p2)  ;;  %vm2731_vm1 = vmpackc.low (!%p240_p2), %vm307_vm0, %vm307_vm0  ;;  %v2790_v55 = vmul.f32 (!%p240_p2), 1e+08, %v2782_v53 }
   0x7   : > { %2331 = vmatpush3.msra.mxu0 (!%p240_p2), %v299_v0  ;;  %p273_p3 = scmp.lt.s32.totalorder (!%p240_p2), %s272_s28, 13  ;;  %v2787_v54 = vld [vmem:[%s3096_s5] sm:$0xff] (!%p240_p2)  ;;  %s279_s22 = smul.u32 (!%p240_p2), 14, %s2161_s25 }
   0x8   : > { %v2793_v56 = vmul.f32 (!%p240_p2), 1e+08, %v2787_v54 }
   0x9   : > { %p280_p4 = scmp.lt.s32.totalorder (!%p240_p2), %s279_s22, 27 }
   0xd   : > { %s3102_s28 = smov (!%p273_p3, %s272_s28), 13  ;;  %s3104_s22 = smov (!%p280_p4, %s279_s22), 27 }
   0xe   : > { %s2243_s29 = sshll.u32 %s3102_s28, 4  ;;  %s2168_s27 = sshll.u32 %s3104_s22, 3 }
   0xf   : > { %s277_s9 = scalar_lea.vmem %s3091_s0, %s2243_s29  ;;  %s3046_s30 = scalar_lea.vmem %s3098_s7, %s2168_s27 }
  0x10   : > { %v285_v1 = vld [vmem:[%s277_s9] sm:$0xff]  ;;  %v286_v2 = vld [vmem:[%s277_s9 + $0x8] sm:$0xff]  ;;  %v2674_v3 = vld [vmem:[%s277_s9 + $0x10] sm:$0xff] }
  0x11   : > { %2332 = vmatprep.mubr.msk.f32.mxu0 %vm307_vm0, %v285_v1  ;;  %v2677_v4 = vpack.c.bf16 %v286_v2, %v285_v1  ;;  %v2682_v5 = vld [vmem:[%s277_s9 + $0x18] sm:$0xff]  ;;  %v2684_v6 = vld [vmem:[%s277_s9 + $0x20] sm:$0xff]  ;;  %v2690_v7 = vld [vmem:[%s277_s9 + $0x28] sm:$0xff] }
  0x12   : > { %2333 = vmatmul.mubr.msk.f32.vlgmr.msra.gmra.mrb[0].mxu0 %vm307_vm0, %v286_v2  ;;  %v2692_v8 = vld [vmem:[%s277_s9 + $0x30] sm:$0xff]  ;;  %v2698_v9 = vld [vmem:[%s277_s9 + $0x38] sm:$0xff]  ;;  %v2700_v10 = vld [vmem:[%s277_s9 + $0x40] sm:$0xff] }
  0x13   : > { %2335 = vmatprep.mubr.msk.f32.mxu0 %vm307_vm0, %v2674_v3  ;;  %v2706_v11 = vld [vmem:[%s277_s9 + $0x48] sm:$0xff]  ;;  %v2708_v12 = vld [vmem:[%s277_s9 + $0x50] sm:$0xff]  ;;  %v2714_v13 = vld [vmem:[%s277_s9 + $0x58] sm:$0xff] }
  0x14   : > { %v2716_v14 = vld [vmem:[%s277_s9 + $0x60] sm:$0xff]  ;;  %v2722_v15 = vld [vmem:[%s277_s9 + $0x68] sm:$0xff] }
  0x16   : > { %2336 = vmatmul.mubr.msk.f32.gmra.mrb[2].mxu0 %vm307_vm0, %v2682_v5 }
  0x17   : > { %2338 = vmatprep.mubr.msk.f32.mxu0 %vm307_vm0, %v2684_v6 }
  0x1a   : > { %2339 = vmatmul.mubr.msk.f32.gmra.mrb[4].mxu0 %vm307_vm0, %v2690_v7 }
  0x1b   : > { %2341 = vmatprep.mubr.msk.f32.mxu0 %vm307_vm0, %v2692_v8 }
  0x1e   : > { %2342 = vmatmul.mubr.msk.f32.gmra.mrb[6].mxu0 %vm307_vm0, %v2698_v9 }
  0x1f   : > { %2344 = vmatprep.mubr.msk.f32.mxu0 %vm307_vm0, %v2700_v10 }
  0x22   : > { %2345 = vmatmul.mubr.msk.f32.gmra.mrb[8].mxu0 %vm307_vm0, %v2706_v11 }
  0x23   : > { %2347 = vmatprep.mubr.msk.f32.mxu0 %vm307_vm0, %v2708_v12 }
  0x26   : > { %2348 = vmatmul.mubr.msk.f32.gmra.mrb[10].mxu0 %vm307_vm0, %v2714_v13 }
  0x27   : > { %2350 = vmatprep.mubr.msk.f32.mxu0 %vm307_vm0, %v2716_v14 }
  0x2a   : > { %2351 = vmatmul.mubr.msk.f32.gmra.mrb[12].mxu0 %vm307_vm0, %v2722_v15 }
  0xe5   : > { %v2334_v17 = vpop.f32.mrb[0].mxu0 }
  0xe6   : > { %v422_v18 = vadd.f32 %v2334_v17, %v2169_v16  ;;  %v416_v19 = vpop.f32.mrb[1].mxu0 }
  0xe7   : > { %v417_v20 = vadd.f32 %v2169_v16, %v416_v19 }
  0xe9   : > { %v2337_v22 = vpop.f32.mrb[2].mxu0  ;;  %2357 = vmatprep.mubr.msk.f32.mxu1 %vm307_vm0, %v417_v20  ;;  %v2474_v23 = vpack.c.bf16 %v422_v18, %v417_v20 }
  0xea   : > { %v432_v24 = vadd.f32 %v2337_v22, %v2169_v16  ;;  %v426_v25 = vpop.f32.mrb[3].mxu0 }
  0xeb   : > { %v427_v26 = vadd.f32 %v2169_v16, %v426_v25  ;;  %2476 = vmatprep.subr.msk.bf16.mxu1 %vm2731_vm1, %v2474_v23 }
  0xec   : > { %2479 = vmatpush3.bf16.xpose.msk.msra.mxu1 %vm2731_vm1, %v2474_v23 }
  0xed   : > { %v2480_v27 = vpack.c.bf16 %v432_v24, %v427_v26  ;;  %v2340_v28 = vpop.f32.mrb[4].mxu0 }
  0xee   : > { %v442_v29 = vadd.f32 %v2340_v28, %v2169_v16  ;;  %v436_v30 = vpop.f32.mrb[5].mxu0 }
  0xef   : > { %v437_v31 = vadd.f32 %v2169_v16, %v436_v30  ;;  %2482 = vmatprep.subr.msk.bf16.mxu1 %vm2731_vm1, %v2480_v27 }
  0xf1   : > { %v2486_v32 = vpack.c.bf16 %v442_v29, %v437_v31  ;;  %v2343_v33 = vpop.f32.mrb[6].mxu0 }
  0xf2   : > { %v452_v34 = vadd.f32 %v2343_v33, %v2169_v16  ;;  %v446_v35 = vpop.f32.mrb[7].mxu0 }
  0xf3   : > { %v447_v36 = vadd.f32 %v2169_v16, %v446_v35  ;;  %2358 = vmatmul.mubr.msk.f32.vlgmr.msra.gmra.mrb[0].mxu1 %vm307_vm0, %v422_v18 }
  0xf4   : > { %2485 = vmatpush3.bf16.xpose.msk.msra.mxu1 %vm2731_vm1, %v2480_v27  ;;  %2364 = vmatprep.mubr.msk.f32.mxu1 %vm307_vm0, %v427_v26 }
  0xf5   : > { %v2492_v37 = vpack.c.bf16 %v452_v34, %v447_v36  ;;  %2488 = vmatprep.subr.msk.bf16.mxu1 %vm2731_vm1, %v2486_v32  ;;  %2378 = vmatprep.mubr.msk.f32.mxu0 %vm307_vm0, %v447_v36  ;;  %v2346_v38 = vpop.f32.mrb[8].mxu0 }
  0xf6   : > { %v462_v39 = vadd.f32 %v2346_v38, %v2169_v16  ;;  %v456_v40 = vpop.f32.mrb[9].mxu0 }
  0xf7   : > { %2494 = vmatprep.subr.msk.bf16.mxu0 %vm2731_vm1, %v2492_v37  ;;  %v457_v41 = vadd.f32 %v2169_v16, %v456_v40 }
  0xf8   : > { %2497 = vmatpush3.bf16.xpose.msk.msra.mxu0 %vm2731_vm1, %v2492_v37 }
  0xf9   : > { %v2498_v42 = vpack.c.bf16 %v462_v39, %v457_v41  ;;  %v2349_v43 = vpop.f32.mrb[10].mxu0 }
  0xfa   : > { %v472_v44 = vadd.f32 %v2349_v43, %v2169_v16  ;;  %v466_v45 = vpop.f32.mrb[11].mxu0 }
  0xfb   : > { %2365 = vmatmul.mubr.msk.f32.vlgmr.msra.gmra.mrb[2].mxu1 %vm307_vm0, %v432_v24  ;;  %v467_v46 = vadd.f32 %v2169_v16, %v466_v45 }
  0xfc   : > { %2491 = vmatpush3.bf16.xpose.msk.msra.mxu1 %vm2731_vm1, %v2486_v32  ;;  %2371 = vmatprep.mubr.msk.f32.mxu1 %vm307_vm0, %v437_v31 }
  0xfd   : > { %v2504_v47 = vpack.c.bf16 %v472_v44, %v467_v46  ;;  %2500 = vmatprep.subr.msk.bf16.mxu1 %vm2731_vm1, %v2498_v42  ;;  %v2352_v48 = vpop.f32.mrb[12].mxu0 }
  0xfe   : > { %v482_v49 = vadd.f32 %v2352_v48, %v2169_v16  ;;  %v476_v50 = vpop.f32.mrb[13].mxu0 }
  0xff   : > { %2379 = vmatmul.mubr.msk.f32.vlgmr.msra.gmra.mrb[14].mxu0 %vm307_vm0, %v452_v34  ;;  %v477_v51 = vadd.f32 %v2169_v16, %v476_v50  ;;  %2506 = vmatprep.subr.msk.bf16.mxu0 %vm2731_vm1, %v2504_v47 }
 0x100   : > { %2509 = vmatpush3.bf16.xpose.msk.msra.mxu0 %vm2731_vm1, %v2504_v47  ;;  %2392 = vmatprep.mubr.msk.f32.mxu0 %vm307_vm0, %v467_v46 }
 0x101   : > { %v2510_v52 = vpack.c.bf16 %v482_v49, %v477_v51  ;;  %2517 = vmatprep.subr.bf16.mxu0 %v2677_v4 }
 0x103   : > { %2372 = vmatmul.mubr.msk.f32.vlgmr.msra.gmra.mrb[4].mxu1 %vm307_vm0, %v442_v29 }
 0x104   : > { %2503 = vmatpush3.bf16.xpose.msk.msra.mxu1 %vm2731_vm1, %v2498_v42  ;;  %2385 = vmatprep.mubr.msk.f32.mxu1 %vm307_vm0, %v457_v41 }
 0x105   : > { %2512 = vmatprep.subr.msk.bf16.mxu1 %vm2731_vm1, %v2510_v52 }
 0x107   : > { %2393 = vmatmul.mubr.msk.f32.vlgmr.msra.gmra.mrb[16].mxu0 %vm307_vm0, %v472_v44 }
 0x108   : > { %2519 = vmatpush3.bf16.msra.mxu0 %v2677_v4 }
 0x10b   : > { %2386 = vmatmul.mubr.msk.f32.vlgmr.msra.gmra.mrb[6].mxu1 %vm307_vm0, %v462_v39 }
 0x10c   : > { %2515 = vmatpush3.bf16.xpose.msk.msra.mxu1 %vm2731_vm1, %v2510_v52  ;;  %2399 = vmatprep.mubr.msk.f32.mxu1 %vm307_vm0, %v477_v51 }
 0x113   : > { %2400 = vmatmul.mubr.msk.f32.vlgmr.msra.gmra.mrb[8].mxu1 %vm307_vm0, %v482_v49 }
 0x1c6   : > { %v2359_v57 = vpop.f32.mrb[0].mxu1 }
 0x1c7   : > { %v1057_v58 = vsub.f32 %v2359_v57, %v2790_v55  ;;  %v557_v59 = vpop.f32.mrb[1].mxu1 }
 0x1c8   : > { %v1056_v60 = vsub.f32 %v557_v59, %v2793_v56 }
 0x1c9   : > { %v1085_v61 = vmul.f32 0.01, %v1057_v58  ;;  %vm1071_vm2 = vcmp.ge.f32.partialorder %v1057_v58, 0.0 }
 0x1ca   : > { %v1084_v62 = vmul.f32 0.01, %v1056_v60  ;;  %vm1070_vm4 = vcmp.ge.f32.partialorder %v1056_v60, 0.0 }
 0x1cb   : > { %v2797_v63 = vsel %vm1071_vm2, %v1057_v58, %v1085_v61 }
 0x1cc   : > { %v1116_v0 = vsel %vm1112_vm3, %v2797_v63, -inf  ;;  %v2801_v1 = vsel %vm1070_vm4, %v1056_v60, %v1084_v62 }
 0x1cd   : > { %1117 = vmax.xlane.f32.xlu1 %v1116_v0  ;;  %v1113_v2 = vsel %vm1112_vm3, %v2801_v1, -inf }
 0x1ce   : > { %1114 = vmax.xlane.f32.xlu0 %v1113_v2  ;;  %v2366_v4 = vpop.f32.mrb[2].mxu1 }
 0x1cf   : > { %v1059_v16 = vsub.f32 %v2366_v4, %v2790_v55  ;;  %v638_v17 = vpop.f32.mrb[3].mxu1 }
 0x1d0   : > { %v1058_v18 = vsub.f32 %v638_v17, %v2793_v56 }
 0x1d1   : > { %v1087_v19 = vmul.f32 0.01, %v1059_v16  ;;  %vm1073_vm5 = vcmp.ge.f32.partialorder %v1059_v16, 0.0 }
 0x1d2   : > { %v1086_v20 = vmul.f32 0.01, %v1058_v18  ;;  %v2380_v21 = vpop.f32.mrb[14].mxu0  ;;  %vm1072_vm6 = vcmp.ge.f32.partialorder %v1058_v18, 0.0 }
 0x1d3   : > { %v1063_v22 = vsub.f32 %v2380_v21, %v2790_v55  ;;  %v800_v23 = vpop.f32.mrb[15].mxu0  ;;  %v2808_v24 = vsel %vm1073_vm5, %v1059_v16, %v1087_v19 }
 0x1d4   : > { %v1062_v25 = vsub.f32 %v800_v23, %v2793_v56  ;;  %v1122_v26 = vsel %vm1112_vm3, %v2808_v24, -inf  ;;  %v2813_v27 = vsel %vm1072_vm6, %v1058_v18, %v1086_v20 }
 0x1d5   : > { %1123 = vmax.xlane.f32.xlu1 %v1122_v26  ;;  %v1119_v28 = vsel %vm1112_vm3, %v2813_v27, -inf  ;;  %v1091_v29 = vmul.f32 0.01, %v1063_v22  ;;  %vm1077_vm8 = vcmp.ge.f32.partialorder %v1063_v22, 0.0 }
 0x1d6   : > { %v1090_v30 = vmul.f32 0.01, %v1062_v25  ;;  %1120 = vmax.xlane.f32.xlu0 %v1119_v28  ;;  %v2373_v31 = vpop.f32.mrb[4].mxu1  ;;  %vm1076_vm7 = vcmp.ge.f32.partialorder %v1062_v25, 0.0 }
 0x1d7   : > { %v1061_v32 = vsub.f32 %v2373_v31, %v2790_v55  ;;  %v719_v33 = vpop.f32.mrb[5].mxu1  ;;  %v2823_v39 = vsel %vm1077_vm8, %v1063_v22, %v1091_v29 }
 0x1d8   : > { %v1060_v34 = vsub.f32 %v719_v33, %v2793_v56  ;;  %v2819_v35 = vsel %vm1076_vm7, %v1062_v25, %v1090_v30  ;;  %v1134_v44 = vsel %vm1112_vm3, %v2823_v39, -inf }
 0x1d9   : > { %v1089_v36 = vmul.f32 0.01, %v1061_v32  ;;  %v1131_v37 = vsel %vm1112_vm3, %v2819_v35, -inf  ;;  %vm1075_vm9 = vcmp.ge.f32.partialorder %v1061_v32, 0.0 }
 0x1da   : > { %v1088_v38 = vmul.f32 0.01, %v1060_v34  ;;  %1132 = vmax.xlane.f32.xlu1 %v1131_v37  ;;  %vm1074_vm10 = vcmp.ge.f32.partialorder %v1060_v34, 0.0  ;;  %v2394_v40 = vpop.f32.mrb[16].mxu0 }
 0x1db   : > { %v2825_v41 = vsel %vm1075_vm9, %v1061_v32, %v1089_v36  ;;  %v962_v42 = vpop.f32.mrb[17].mxu0  ;;  %v1067_v46 = vsub.f32 %v2394_v40, %v2790_v55 }
 0x1dc   : > { %v1128_v43 = vsel %vm1112_vm3, %v2825_v41, -inf  ;;  %v2831_v45 = vsel %vm1074_vm10, %v1060_v34, %v1088_v38  ;;  %v1066_v48 = vsub.f32 %v962_v42, %v2793_v56 }
 0x1dd   : > { %1129 = vmax.xlane.f32.xlu0 %v1128_v43  ;;  %v1125_v52 = vsel %vm1112_vm3, %v2831_v45, -inf  ;;  %v1095_v58 = vmul.f32 0.01, %v1067_v46  ;;  %vm1081_vm13 = vcmp.ge.f32.partialorder %v1067_v46, 0.0 }
 0x1de   : > { %1135 = vmax.xlane.f32.xlu1 %v1134_v44  ;;  %v2387_v47 = vpop.f32.mrb[6].mxu1  ;;  %v1094_v60 = vmul.f32 0.01, %v1066_v48  ;;  %vm1080_vm14 = vcmp.ge.f32.partialorder %v1066_v48, 0.0 }
 0x1df   : > { %v1065_v49 = vsub.f32 %v2387_v47, %v2790_v55  ;;  %v881_v50 = vpop.f32.mrb[7].mxu1  ;;  %v2847_v4 = vsel %vm1081_vm13, %v1067_v46, %v1095_v58 }
 0x1e0   : > { %v1064_v51 = vsub.f32 %v881_v50, %v2793_v56  ;;  %v2849_v17 = vsel %vm1080_vm14, %v1066_v48, %v1094_v60  ;;  %v1146_v21 = vsel %vm1112_vm3, %v2847_v4, -inf }
 0x1e1   : > { %v1093_v57 = vmul.f32 0.01, %v1065_v49  ;;  %1126 = vmax.xlane.f32.xlu0 %v1125_v52  ;;  %vm1079_vm11 = vcmp.ge.f32.partialorder %v1065_v49, 0.0  ;;  %v1143_v23 = vsel %vm1112_vm3, %v2849_v17, -inf }
 0x1e2   : > { %v1092_v59 = vmul.f32 0.01, %v1064_v51  ;;  %vm1078_vm12 = vcmp.ge.f32.partialorder %v1064_v51, 0.0 }
 0x1e3   : > { %v2839_v61 = vsel %vm1079_vm11, %v1065_v49, %v1093_v57 }
 0x1e4   : > { %v1140_v62 = vsel %vm1112_vm3, %v2839_v61, -inf  ;;  %v2843_v0 = vsel %vm1078_vm12, %v1064_v51, %v1092_v59 }
 0x1e5   : > { %1141 = vmax.xlane.f32.xlu1 %v1140_v62  ;;  %v1137_v2 = vsel %vm1112_vm3, %v2843_v0, -inf }
 0x1e6   : > { %1138 = vmax.xlane.f32.xlu0 %v1137_v2  ;;  %v2401_v16 = vpop.f32.mrb[8].mxu1 }
 0x1e7   : > { %v1069_v18 = vsub.f32 %v2401_v16, %v2790_v55  ;;  %v1043_v19 = vpop.f32.mrb[9].mxu1 }
 0x1e8   : > { %v1068_v20 = vsub.f32 %v1043_v19, %v2793_v56 }
 0x1e9   : > { %v1097_v22 = vmul.f32 0.01, %v1069_v18  ;;  %1147 = vmax.xlane.f32.xlu1 %v1146_v21  ;;  %vm1083_vm15 = vcmp.ge.f32.partialorder %v1069_v18, 0.0 }
 0x1ea   : > { %v1096_v25 = vmul.f32 0.01, %v1068_v20  ;;  %1144 = vmax.xlane.f32.xlu0 %v1143_v23  ;;  %vm1082_vm1 = vcmp.ge.f32.partialorder %v1068_v20, 0.0 }
 0x1eb   : > { %v2857_v26 = vsel %vm1083_vm15, %v1069_v18, %v1097_v22 }
 0x1ec   : > { %v1152_v55 = vsel %vm1112_vm3, %v2857_v26, -inf  ;;  %v2861_v28 = vsel %vm1082_vm1, %v1068_v20, %v1096_v25 }
 0x1ed   : > { %1153 = vmax.xlane.f32.xlu1 %v1152_v55  ;;  %v1149_v56 = vsel %vm1112_vm3, %v2861_v28, -inf }
 0x1ee   : > { %1150 = vmax.xlane.f32.xlu0 %v1149_v56 }
 0x25a   : > { %v1118_v29 = vpop.xlane.xlu1 %1117 }
 0x25b   : > { %v1156_v30 = vsub.f32 %v2797_v63, %v1118_v29  ;;  %v1115_v31 = vpop.xlane.xlu0 %1114 }
 0x25c   : > { %v1155_v32 = vsub.f32 %v2801_v1, %v1115_v31 }
 0x25d   : > { %v1171_v33 = vmul.f32 1.442695, %v1156_v30 }
 0x25e   : > { %v1169_v34 = vmul.f32 1.442695, %v1155_v32 }
 0x25f   : > { %2554 = vpow2.f32 %v1171_v33 }
 0x260   : > { %2556 = vpow2.f32 %v1169_v34 }
 0x262   : > { %v1124_v36 = vpop.xlane.xlu1 %1123 }
 0x263   : > { %v1158_v37 = vsub.f32 %v2808_v24, %v1124_v36  ;;  %v1121_v38 = vpop.xlane.xlu0 %1120 }
 0x264   : > { %v1157_v40 = vsub.f32 %v2813_v27, %v1121_v38 }
 0x265   : > { %v1175_v42 = vmul.f32 1.442695, %v1158_v37 }
 0x266   : > { %v1173_v43 = vmul.f32 1.442695, %v1157_v40 }
 0x267   : > { %2558 = vpow2.f32 %v1175_v42  ;;  %v1133_v44 = vpop.xlane.xlu1 %1132 }
 0x268   : > { %v1161_v46 = vsub.f32 %v2819_v35, %v1133_v44  ;;  %2560 = vpow2.f32 %v1173_v43 }
 0x269   : > { %v2870_v63 = vpop.eup %2554 }
 0x26a   : > { %v1181_v1 = vmul.f32 1.442695, %v1161_v46  ;;  %v1130_v47 = vpop.xlane.xlu0 %1129  ;;  %v1200_v48 = vsel %vm1112_vm3, %v2870_v63, 0.0  ;;  %v2874_v49 = vpop.eup %2556 }
 0x26b   : > { %v1160_v24 = vsub.f32 %v2825_v41, %v1130_v47  ;;  %v1136_v50 = vpop.xlane.xlu1 %1135  ;;  %1201 = vadd.xlane.f32.xlu0 %v1200_v48  ;;  %v1197_v57 = vsel %vm1112_vm3, %v2874_v49, 0.0 }
 0x26c   : > { %v1162_v27 = vsub.f32 %v2823_v39, %v1136_v50  ;;  %2562 = vpow2.f32 %v1181_v1 }
 0x26d   : > { %v1179_v51 = vmul.f32 1.442695, %v1160_v24 }
 0x26e   : > { %v1183_v52 = vmul.f32 1.442695, %v1162_v27  ;;  %v1127_v35 = vpop.xlane.xlu0 %1126 }
 0x26f   : > { %2564 = vpow2.f32 %v1179_v51  ;;  %v1159_v58 = vsub.f32 %v2831_v45, %v1127_v35  ;;  %1198 = vadd.xlane.f32.xlu0 %v1197_v57  ;;  %v2520_v51 = vpack.c.bf16 %v2682_v5, %v2674_v3  ;;  %v2524_v35 = vpack.c.bf16 %v2690_v7, %v2684_v6  ;;  %v2950_v7 = vld [vmem:[%s3097_s6] sm:$0xff] }
 0x270   : > { %2566 = vpow2.f32 %v1183_v52  ;;  %v2939_v52 = vpack.c.bf16 %v2698_v9, %v2692_v8 }
 0x271   : > { %v2881_v59 = vpop.eup %2558  ;;  %v1177_v60 = vmul.f32 1.442695, %v1159_v58  ;;  %2521 = vmatprep.subr.bf16.mxu1 %v2520_v51  ;;  %2525 = vmatprep.subr.bf16.mxu0 %v2524_v35 }
 0x272   : > { %v1142_v41 = vpop.xlane.xlu1 %1141  ;;  %v1206_v62 = vsel %vm1112_vm3, %v2881_v59, 0.0  ;;  %v2885_v39 = vpop.eup %2560  ;;  %2523 = vmatpush3.bf16.msra.mxu1 %v2520_v51 }
 0x273   : > { %2568 = vpow2.f32 %v1177_v60  ;;  %v1164_v2 = vsub.f32 %v2839_v61, %v1142_v41  ;;  %v1139_v16 = vpop.xlane.xlu0 %1138  ;;  %1207 = vadd.xlane.f32.xlu1 %v1206_v62  ;;  %v1203_v21 = vsel %vm1112_vm3, %v2885_v39, 0.0  ;;  %2529 = vmatprep.subr.bf16.mxu1 %v2939_v52 }
 0x274   : > { %v1163_v18 = vsub.f32 %v2843_v0, %v1139_v16 }
 0x275   : > { %v1187_v19 = vmul.f32 1.442695, %v1164_v2 }
 0x276   : > { %v1185_v45 = vmul.f32 1.442695, %v1163_v18  ;;  %v1148_v20 = vpop.xlane.xlu1 %1147  ;;  %v2891_v22 = vpop.eup %2562 }
 0x277   : > { %2570 = vpow2.f32 %v1187_v19  ;;  %v1166_v23 = vsub.f32 %v2847_v4, %v1148_v20  ;;  %v1145_v25 = vpop.xlane.xlu0 %1144  ;;  %1204 = vadd.xlane.f32.xlu1 %v1203_v21  ;;  %v1215_v30 = vsel %vm1112_vm3, %v2891_v22, 0.0 }
 0x278   : > { %2572 = vpow2.f32 %v1185_v45  ;;  %v1165_v61 = vsub.f32 %v2849_v17, %v1145_v25 }
 0x279   : > { %v2895_v55 = vpop.eup %2564  ;;  %v1191_v56 = vmul.f32 1.442695, %v1166_v23  ;;  %v2532_v23 = vpack.c.bf16 %v2706_v11, %v2700_v10 }
 0x27a   : > { %v1189_v0 = vmul.f32 1.442695, %v1165_v61  ;;  %v1154_v29 = vpop.xlane.xlu1 %1153  ;;  %v1212_v31 = vsel %vm1112_vm3, %v2895_v55, 0.0  ;;  %v2901_v32 = vpop.eup %2566 }
 0x27b   : > { %2574 = vpow2.f32 %v1191_v56  ;;  %v1168_v4 = vsub.f32 %v2857_v26, %v1154_v29  ;;  %1216 = vadd.xlane.f32.xlu1 %v1215_v30  ;;  %1213 = vadd.xlane.f32.xlu0 %v1212_v31  ;;  %v1151_v33 = vpop.xlane.xlu0 %1150  ;;  %v1218_v38 = vsel %vm1112_vm3, %v2901_v32, 0.0 }
 0x27c   : > { %2576 = vpow2.f32 %v1189_v0  ;;  %v1167_v17 = vsub.f32 %v2861_v28, %v1151_v33 }
 0x27d   : > { %v2905_v34 = vpop.eup %2568  ;;  %v1195_v36 = vmul.f32 1.442695, %v1168_v4 }
 0x27e   : > { %v1193_v37 = vmul.f32 1.442695, %v1167_v17  ;;  %v1209_v40 = vsel %vm1112_vm3, %v2905_v34, 0.0  ;;  %v2536_v17 = vpack.c.bf16 %v2714_v13, %v2708_v12 }
 0x27f   : > { %2578 = vpow2.f32 %v1195_v36  ;;  %1219 = vadd.xlane.f32.xlu1 %v1218_v38  ;;  %1210 = vadd.xlane.f32.xlu0 %v1209_v40 }
 0x280   : > { %2580 = vpow2.f32 %v1193_v37 }
 0x281   : > { %v2911_v26 = vpop.eup %2570 }
 0x282   : > { %v2913_v42 = vpop.eup %2572  ;;  %v1224_v28 = vsel %vm1112_vm3, %v2911_v26, 0.0 }
 0x283   : > { %1225 = vadd.xlane.f32.xlu1 %v1224_v28  ;;  %v1221_v43 = vsel %vm1112_vm3, %v2913_v42, 0.0 }
 0x284   : > { %1222 = vadd.xlane.f32.xlu0 %v1221_v43 }
 0x285   : > { %v2919_v44 = vpop.eup %2574 }
 0x286   : > { %v2921_v46 = vpop.eup %2576  ;;  %v1230_v1 = vsel %vm1112_vm3, %v2919_v44, 0.0 }
 0x287   : > { %1231 = vadd.xlane.f32.xlu1 %v1230_v1  ;;  %v1227_v47 = vsel %vm1112_vm3, %v2921_v46, 0.0 }
 0x288   : > { %1228 = vadd.xlane.f32.xlu0 %v1227_v47 }
 0x289   : > { %v2927_v48 = vpop.eup %2578 }
 0x28a   : > { %v2929_v24 = vpop.eup %2580  ;;  %v1236_v50 = vsel %vm1112_vm3, %v2927_v48, 0.0 }
 0x28b   : > { %1237 = vadd.xlane.f32.xlu1 %v1236_v50  ;;  %v1233_v27 = vsel %vm1112_vm3, %v2929_v24, 0.0 }
 0x28c   : > { %1234 = vadd.xlane.f32.xlu0 %v1233_v27 }
 0x2f8   : > { %v1202_v57 = vpop.xlane.xlu0 %1201 }
 0x2f9   : > { %2582 = vrcp.f32 %v1202_v57 }
 0x2fc   : > { %v1199_v58 = vpop.xlane.xlu0 %1198 }
 0x2fd   : > { %2584 = vrcp.f32 %v1199_v58  ;;  %v2540_v58 = vpack.c.bf16 %v2722_v15, %v2716_v14 }
 0x300   : > { %v1208_v60 = vpop.xlane.xlu1 %1207 }
 0x301   : > { %2586 = vrcp.f32 %v1208_v60 }
 0x303   : > { %v2583_v41 = vpop.eup %2582 }
 0x304   : > { %v1205_v3 = vpop.xlane.xlu1 %1204  ;;  %v1254_v5 = vmul.f32 %v2583_v41, %v2870_v63  ;;  %v2956_v63 = vld [vmem:[%s3097_s6 + $0x8] sm:$0xff] }
 0x305   : > { %2588 = vrcp.f32 %v1205_v3 }
 0x306   : > { %v1268_v6 = vadd.f32 %v1254_v5, %v2782_v53 }
 0x307   : > { %v2585_v62 = vpop.eup %2584 }
 0x308   : > { %v1217_v8 = vpop.xlane.xlu1 %1216  ;;  %v1214_v9 = vpop.xlane.xlu0 %1213  ;;  %v1253_v2 = vmul.f32 %v2585_v62, %v2874_v49  ;;  %v1284_v21 = vmul.f32 %v2956_v63, %v1268_v6 }
 0x309   : > { %2590 = vrcp.f32 %v1217_v8 }
 0x30a   : > { %2592 = vrcp.f32 %v1214_v9  ;;  %v1267_v16 = vadd.f32 %v1253_v2, %v2787_v54 }
 0x30b   : > { %v2587_v18 = vpop.eup %2586 }
 0x30c   : > { %v1220_v19 = vpop.xlane.xlu1 %1219  ;;  %v1211_v45 = vpop.xlane.xlu0 %1210  ;;  %v1283_v49 = vmul.f32 %v2950_v7, %v1267_v16  ;;  %v1256_v20 = vmul.f32 %v2587_v18, %v2881_v59 }
 0x30d   : > { %2594 = vrcp.f32 %v1220_v19 }
 0x30e   : > { %2596 = vrcp.f32 %v1211_v45  ;;  %2406 = vmatprep.mubr.msk.f32.mxu0 %vm1112_vm3, %v1283_v49  ;;  %v1270_v0 = vadd.f32 %v1256_v20, %v2782_v53 }
 0x30f   : > { %v2589_v25 = vpop.eup %2588  ;;  %2407 = vmatmul.mubr.msk.f32.vlgmr.msra.gmra.mrb[18].mxu0 %vm1112_vm3, %v1284_v21 }
 0x310   : > { %v1226_v61 = vpop.xlane.xlu1 %1225  ;;  %v1255_v56 = vmul.f32 %v2589_v25, %v2885_v39  ;;  %2527 = vmatpush3.bf16.msra.mxu0 %v2524_v35  ;;  %v1286_v39 = vmul.f32 %v2956_v63, %v1270_v0 }
 0x311   : > { %2598 = vrcp.f32 %v1226_v61  ;;  %v1223_v59 = vpop.xlane.xlu0 %1222  ;;  %2533 = vmatprep.subr.bf16.mxu0 %v2532_v23 }
 0x312   : > { %2600 = vrcp.f32 %v1223_v59  ;;  %v1269_v29 = vadd.f32 %v1255_v56, %v2787_v54 }
 0x313   : > { %v2591_v30 = vpop.eup %2590 }
 0x314   : > { %v2593_v10 = vpop.eup %2592  ;;  %v1232_v11 = vpop.xlane.xlu1 %1231  ;;  %v1285_v31 = vmul.f32 %v2950_v7, %v1269_v29  ;;  %v1259_v4 = vmul.f32 %v2591_v30, %v2891_v22  ;;  %v3039_v29 = vld [vmem:[%s3095_s4] ss:$0 sm:$0xff] }
 0x315   : > { %2602 = vrcp.f32 %v1232_v11  ;;  %v1229_v33 = vpop.xlane.xlu0 %1228  ;;  %v1258_v36 = vmul.f32 %v2593_v10, %v2895_v55 }
 0x316   : > { %2604 = vrcp.f32 %v1229_v33  ;;  %2413 = vmatprep.mubr.msk.f32.mxu1 %vm1112_vm3, %v1285_v31  ;;  %v1273_v37 = vadd.f32 %v1259_v4, %v2787_v54 }
 0x317   : > { %v2595_v38 = vpop.eup %2594  ;;  %2414 = vmatmul.mubr.msk.f32.vlgmr.msra.gmra.mrb[10].mxu1 %vm1112_vm3, %v1286_v39  ;;  %v1272_v55 = vadd.f32 %v1258_v36, %v2782_v53 }
 0x318   : > { %v2597_v40 = vpop.eup %2596  ;;  %v1260_v22 = vmul.f32 %v2595_v38, %v2901_v32  ;;  %v1238_v28 = vpop.xlane.xlu1 %1237  ;;  %v1289_v43 = vmul.f32 %v2950_v7, %v1273_v37  ;;  %2531 = vmatpush3.bf16.msra.mxu1 %v2939_v52 }
 0x319   : > { %2606 = vrcp.f32 %v1238_v28  ;;  %v1235_v12 = vpop.xlane.xlu0 %1234  ;;  %v1257_v13 = vmul.f32 %v2597_v40, %v2905_v34  ;;  %2537 = vmatprep.subr.bf16.mxu1 %v2536_v17  ;;  %v1288_v57 = vmul.f32 %v2956_v63, %v1272_v55 }
 0x31a   : > { %v1274_v1 = vadd.f32 %v1260_v22, %v2782_v53  ;;  %2608 = vrcp.f32 %v1235_v12  ;;  %2427 = vmatprep.mubr.msk.f32.mxu1 %vm1112_vm3, %v1289_v43 }
 0x31b   : > { %v2599_v47 = vpop.eup %2598  ;;  %v1271_v32 = vadd.f32 %v1257_v13, %v2787_v54 }
 0x31c   : > { %v2601_v50 = vpop.eup %2600  ;;  %v1262_v27 = vmul.f32 %v2599_v47, %v2911_v26  ;;  %v1290_v51 = vmul.f32 %v2956_v63, %v1274_v1 }
 0x31d   : > { %v1287_v52 = vmul.f32 %v2950_v7, %v1271_v32  ;;  %v1261_v34 = vmul.f32 %v2601_v50, %v2913_v42 }
 0x31e   : > { %v1276_v35 = vadd.f32 %v1262_v27, %v2782_v53  ;;  %2428 = vmatmul.mubr.msk.f32.vlgmr.msra.gmra.mrb[12].mxu1 %vm1112_vm3, %v1290_v51 }
 0x31f   : > { %v2603_v60 = vpop.eup %2602  ;;  %2420 = vmatprep.mubr.msk.f32.mxu0 %vm1112_vm3, %v1287_v52  ;;  %v1275_v26 = vadd.f32 %v1261_v34, %v2787_v54  ;;  %2539 = vmatpush3.bf16.msra.mxu1 %v2536_v17 }
 0x320   : > { %v2605_v41 = vpop.eup %2604  ;;  %v1264_v3 = vmul.f32 %v2603_v60, %v2919_v44  ;;  %2421 = vmatmul.mubr.msk.f32.vlgmr.msra.gmra.mrb[20].mxu0 %vm1112_vm3, %v1288_v57  ;;  %v1292_v14 = vmul.f32 %v2956_v63, %v1276_v35 }
 0x321   : > { %2535 = vmatpush3.bf16.msra.mxu0 %v2532_v23  ;;  %v1291_v42 = vmul.f32 %v2950_v7, %v1275_v26  ;;  %v1263_v5 = vmul.f32 %v2605_v41, %v2921_v46 }
 0x322   : > { %v1278_v62 = vadd.f32 %v1264_v3, %v2782_v53  ;;  %2541 = vmatprep.subr.bf16.mxu0 %v2540_v58 }
 0x323   : > { %v2607_v15 = vpop.eup %2606  ;;  %2434 = vmatprep.mubr.msk.f32.mxu0 %vm1112_vm3, %v1291_v42  ;;  %v1277_v8 = vadd.f32 %v1263_v5, %v2787_v54 }
 0x324   : > { %v2609_v9 = vpop.eup %2608  ;;  %v1266_v44 = vmul.f32 %v2607_v15, %v2927_v48  ;;  %2435 = vmatmul.mubr.msk.f32.vlgmr.msra.gmra.mrb[22].mxu0 %vm1112_vm3, %v1292_v14  ;;  %v1294_v16 = vmul.f32 %v2956_v63, %v1278_v62 }
 0x325   : > { %v1265_v2 = vmul.f32 %v2609_v9, %v2929_v24  ;;  %v1293_v6 = vmul.f32 %v2950_v7, %v1277_v8  ;;  %2543 = vmatpush3.bf16.msra.mxu0 %v2540_v58 }
 0x326   : > { %v1280_v46 = vadd.f32 %v1266_v44, %v2782_v53  ;;  %v1864_v53 = vld [vmem:[%s3094_s3] sm:$0xff] }
 0x327   : > { %2441 = vmatprep.mubr.msk.f32.mxu1 %vm1112_vm3, %v1293_v6  ;;  %v1279_v18 = vadd.f32 %v1265_v2, %v2787_v54  ;;  %2451 = vmatprep.subr.mxu0 %v1864_v53 }
 0x328   : > { %2442 = vmatmul.mubr.msk.f32.vlgmr.msra.gmra.mrb[14].mxu1 %vm1112_vm3, %v1294_v16  ;;  %v1296_v48 = vmul.f32 %v2956_v63, %v1280_v46  ;;  %2544 = vmatprep.subr.mxu1 %v1864_v53 }
 0x329   : > { %v1295_v19 = vmul.f32 %v2950_v7, %v1279_v18  ;;  %2545 = vmatpush3.msra.mxu1 %v1864_v53 }
 0x32b   : > { %2448 = vmatprep.mubr.msk.f32.mxu0 %vm1112_vm3, %v1295_v19 }
 0x32c   : > { %2449 = vmatmul.mubr.msk.f32.vlgmr.msra.gmra.mrb[24].mxu0 %vm1112_vm3, %v1296_v48 }
 0x32d   : > { %2452 = vmatpush3.msra.mxu0 %v1864_v53 }
 0x3e2   : > { %v2408_v24 = vpop.f32.mrb[18].mxu0 }
 0x3e3   : > { %v1369_v54 = vpop.f32.mrb[19].mxu0 }
 0x3e4   : > { %2453 = vmatprep.mubr.msk.f32.mxu0 %vm307_vm0, %v1369_v54 }
 0x3e5   : > { %2454 = vmatmul.mubr.msk.f32.vlgmr.msra.gmra.mrb[26].mxu0 %vm307_vm0, %v2408_v24 }
 0x3ea   : > { %v2415_v7 = vpop.f32.mrb[10].mxu1 }
 0x3eb   : > { %v1450_v63 = vpop.f32.mrb[11].mxu1 }
 0x3ec   : > { %2456 = vmatprep.mubr.msk.f32.mxu0 %vm307_vm0, %v1450_v63 }
 0x3ed   : > { %2457 = vmatmul.mubr.msk.f32.gmra.mrb[28].mxu0 %vm307_vm0, %v2415_v7 }
 0x3f1   : > { %v2429_v45 = vpop.f32.mrb[12].mxu1 }
 0x3f2   : > { %v1612_v49 = vpop.f32.mrb[13].mxu1 }
 0x3f3   : > { %v2422_v20 = vpop.f32.mrb[20].mxu0  ;;  %2462 = vmatprep.mubr.msk.f32.mxu1 %vm307_vm0, %v1612_v49 }
 0x3f4   : > { %v1531_v21 = vpop.f32.mrb[21].mxu0  ;;  %2463 = vmatmul.mubr.msk.f32.vlgmr.msra.gmra.mrb[16].mxu1 %vm307_vm0, %v2429_v45 }
 0x3f5   : > { %2459 = vmatprep.mubr.msk.f32.mxu0 %vm307_vm0, %v1531_v21 }
 0x3f6   : > { %2460 = vmatmul.mubr.msk.f32.gmra.mrb[30].mxu0 %vm307_vm0, %v2422_v20 }
 0x3f7   : > { %v2436_v23 = vpop.f32.mrb[22].mxu0 }
 0x3f8   : > { %v1693_v25 = vpop.f32.mrb[23].mxu0 }
 0x3f9   : > { %2465 = vmatprep.mubr.msk.f32.mxu1 %vm307_vm0, %v1693_v25 }
 0x3fa   : > { %2466 = vmatmul.mubr.msk.f32.gmra.mrb[18].mxu1 %vm307_vm0, %v2436_v23 }
 0x3fb   : > { %v2443_v61 = vpop.f32.mrb[14].mxu1 }
 0x3fc   : > { %v1774_v56 = vpop.f32.mrb[15].mxu1 }
 0x3fd   : > { %2468 = vmatprep.mubr.msk.f32.mxu1 %vm307_vm0, %v1774_v56 }
 0x3fe   : > { %2469 = vmatmul.mubr.msk.f32.gmra.mrb[20].mxu1 %vm307_vm0, %v2443_v61 }
 0x3ff   : > { %v2450_v0 = vpop.f32.mrb[24].mxu0 }
 0x400   : > { %v1855_v59 = vpop.f32.mrb[25].mxu0 }
 0x401   : > { %2471 = vmatprep.mubr.msk.f32.mxu1 %vm307_vm0, %v1855_v59 }
 0x402   : > { %2472 = vmatmul.mubr.msk.f32.gmra.mrb[22].mxu1 %vm307_vm0, %v2450_v0 }
 0x4b8   : > { %v2455_v30 = vpop.f32.mrb[26].mxu0 }
 0x4b9   : > { %v1986_v10 = vadd.f32 %v2455_v30, %v3039_v29  ;;  %v1980_v11 = vpop.f32.mrb[27].mxu0 }
 0x4ba   : > { %v1981_v31 = vadd.f32 %v3039_v29, %v1980_v11 }
 0x4bb   : > { %vm2050_vm2 = vcmp.ge.f32.partialorder %v1986_v10, 0.0  ;;  %v2064_v4 = vmul.f32 0.01, %v1986_v10 }
 0x4bc   : > { %vm2049_vm3 = vcmp.ge.f32.partialorder %v1981_v31, 0.0  ;;  %v2063_v33 = vmul.f32 0.01, %v1981_v31 }
 0x4bd   : > { %v2078_v39 = vsel %vm2050_vm2, %v1986_v10, %v2064_v4 }
 0x4be   : > { %2092 = vst.msk [vmem:[%s3046_s30 + $0x8] sm:$0xff] %vm307_vm0, %v2078_v39  ;;  %v2077_v17 = vsel %vm2049_vm3, %v1981_v31, %v2063_v33 }
 0x4bf   : > { %2091 = vst.msk [vmem:[%s3046_s30] sm:$0xff] %vm307_vm0, %v2077_v17 }
 0x4c0   : > { %v2458_v36 = vpop.f32.mrb[28].mxu0 }
 0x4c1   : > { %v1996_v37 = vadd.f32 %v2458_v36, %v3039_v29  ;;  %v1990_v38 = vpop.f32.mrb[29].mxu0 }
 0x4c2   : > { %v1991_v40 = vadd.f32 %v3039_v29, %v1990_v38 }
 0x4c3   : > { %vm2052_vm4 = vcmp.ge.f32.partialorder %v1996_v37, 0.0  ;;  %v2066_v22 = vmul.f32 0.01, %v1996_v37 }
 0x4c4   : > { %vm2051_vm5 = vcmp.ge.f32.partialorder %v1991_v40, 0.0  ;;  %v2065_v28 = vmul.f32 0.01, %v1991_v40 }
 0x4c5   : > { %v2080_v43 = vsel %vm2052_vm4, %v1996_v37, %v2066_v22 }
 0x4c6   : > { %2094 = vst.msk [vmem:[%s3046_s30 + $0x18] sm:$0xff] %vm307_vm0, %v2080_v43  ;;  %v2079_v12 = vsel %vm2051_vm5, %v1991_v40, %v2065_v28 }
 0x4c7   : > { %2093 = vst.msk [vmem:[%s3046_s30 + $0x10] sm:$0xff] %vm307_vm0, %v2079_v12  ;;  %v2464_v13 = vpop.f32.mrb[16].mxu1 }
 0x4c8   : > { %v2016_v55 = vadd.f32 %v2464_v13, %v3039_v29  ;;  %v2010_v1 = vpop.f32.mrb[17].mxu1 }
 0x4c9   : > { %v2461_v47 = vpop.f32.mrb[30].mxu0  ;;  %v2011_v32 = vadd.f32 %v3039_v29, %v2010_v1 }
 0x4ca   : > { %vm2056_vm6 = vcmp.ge.f32.partialorder %v2016_v55, 0.0  ;;  %v2070_v50 = vmul.f32 0.01, %v2016_v55  ;;  %v2006_v27 = vadd.f32 %v2461_v47, %v3039_v29  ;;  %v2000_v51 = vpop.f32.mrb[31].mxu0 }
 0x4cb   : > { %vm2055_vm7 = vcmp.ge.f32.partialorder %v2011_v32, 0.0  ;;  %v2069_v52 = vmul.f32 0.01, %v2011_v32  ;;  %v2001_v34 = vadd.f32 %v3039_v29, %v2000_v51 }
 0x4cc   : > { %v2084_v35 = vsel %vm2056_vm6, %v2016_v55, %v2070_v50  ;;  %vm2054_vm8 = vcmp.ge.f32.partialorder %v2006_v27, 0.0  ;;  %v2068_v57 = vmul.f32 0.01, %v2006_v27 }
 0x4cd   : > { %2098 = vst.msk [vmem:[%s3046_s30 + $0x38] sm:$0xff] %vm307_vm0, %v2084_v35  ;;  %v2083_v58 = vsel %vm2055_vm7, %v2011_v32, %v2069_v52  ;;  %vm2053_vm9 = vcmp.ge.f32.partialorder %v2001_v34, 0.0  ;;  %v2067_v60 = vmul.f32 0.01, %v2001_v34  ;;  %v2467_v26 = vpop.f32.mrb[18].mxu1 }
 0x4ce   : > { %v2082_v41 = vsel %vm2054_vm8, %v2006_v27, %v2068_v57  ;;  %2097 = vst.msk [vmem:[%s3046_s30 + $0x30] sm:$0xff] %vm307_vm0, %v2083_v58  ;;  %v2026_v3 = vadd.f32 %v2467_v26, %v3039_v29  ;;  %v2020_v42 = vpop.f32.mrb[19].mxu1 }
 0x4cf   : > { %2096 = vst.msk [vmem:[%s3046_s30 + $0x28] sm:$0xff] %vm307_vm0, %v2082_v41  ;;  %v2081_v5 = vsel %vm2053_vm9, %v2001_v34, %v2067_v60  ;;  %v2021_v62 = vadd.f32 %v3039_v29, %v2020_v42 }
 0x4d0   : > { %2095 = vst.msk [vmem:[%s3046_s30 + $0x20] sm:$0xff] %vm307_vm0, %v2081_v5  ;;  %vm2058_vm10 = vcmp.ge.f32.partialorder %v2026_v3, 0.0  ;;  %v2072_v14 = vmul.f32 0.01, %v2026_v3 }
 0x4d1   : > { %vm2057_vm11 = vcmp.ge.f32.partialorder %v2021_v62, 0.0  ;;  %v2071_v15 = vmul.f32 0.01, %v2021_v62  ;;  %v2470_v8 = vpop.f32.mrb[20].mxu1 }
 0x4d2   : > { %v2086_v9 = vsel %vm2058_vm10, %v2026_v3, %v2072_v14  ;;  %v2036_v44 = vadd.f32 %v2470_v8, %v3039_v29  ;;  %v2030_v2 = vpop.f32.mrb[21].mxu1 }
 0x4d3   : > { %2100 = vst.msk [vmem:[%s3046_s30 + $0x48] sm:$0xff] %vm307_vm0, %v2086_v9  ;;  %v2085_v6 = vsel %vm2057_vm11, %v2021_v62, %v2071_v15  ;;  %v2031_v46 = vadd.f32 %v3039_v29, %v2030_v2 }
 0x4d4   : > { %2099 = vst.msk [vmem:[%s3046_s30 + $0x40] sm:$0xff] %vm307_vm0, %v2085_v6  ;;  %vm2060_vm12 = vcmp.ge.f32.partialorder %v2036_v44, 0.0  ;;  %v2074_v16 = vmul.f32 0.01, %v2036_v44 }
 0x4d5   : > { %vm2059_vm13 = vcmp.ge.f32.partialorder %v2031_v46, 0.0  ;;  %v2073_v18 = vmul.f32 0.01, %v2031_v46  ;;  %v2473_v19 = vpop.f32.mrb[22].mxu1 }
 0x4d6   : > { %v2088_v48 = vsel %vm2060_vm12, %v2036_v44, %v2074_v16  ;;  %v2046_v53 = vadd.f32 %v2473_v19, %v3039_v29  ;;  %v2040_v24 = vpop.f32.mrb[23].mxu1 }
 0x4d7   : > { %2102 = vst.msk [vmem:[%s3046_s30 + $0x58] sm:$0xff] %vm307_vm0, %v2088_v48  ;;  %v2087_v54 = vsel %vm2059_vm13, %v2031_v46, %v2073_v18  ;;  %v2041_v7 = vadd.f32 %v3039_v29, %v2040_v24 }
 0x4d8   : > { %2101 = vst.msk [vmem:[%s3046_s30 + $0x50] sm:$0xff] %vm307_vm0, %v2087_v54  ;;  %vm2062_vm14 = vcmp.ge.f32.partialorder %v2046_v53, 0.0  ;;  %v2076_v63 = vmul.f32 0.01, %v2046_v53 }
 0x4d9   : > { %vm2061_vm15 = vcmp.ge.f32.partialorder %v2041_v7, 0.0  ;;  %v2075_v45 = vmul.f32 0.01, %v2041_v7 }
 0x4da   : > { %v2090_v49 = vsel %vm2062_vm14, %v2046_v53, %v2076_v63 }
 0x4db   : > { %2104 = vst.msk [vmem:[%s3046_s30 + $0x68] sm:$0xff] %vm307_vm0, %v2090_v49  ;;  %v2089_v20 = vsel %vm2061_vm15, %v2041_v7, %v2075_v45 }
 0x4dc   : > { %2103 = vst.msk [vmem:[%s3046_s30 + $0x60] sm:$0xff] %vm307_vm0, %v2089_v20 }
 0x4dd PF: > { %s17_s24 = sadd.s32 1, %s2616_s24  }
 0x4de   : > { %p14_p5 = scmp.ge.s32.totalorder %s17_s24, 4  }
 0x4e0   :  { %16 = sbr.rel (!%p14_p5) target bundleno = 1 (0x1), region = 78 }

</bundles_post_ra>
